<compile_context>
chip_gen: v6e
topology: v6e:2x2x1
jax: 0.10.0
libtpu: 0.0.40
codegen_flags: <defaults>
</compile_context>

<pallas_src>
import functools

import jax
import jax.numpy as jnp
from jax.experimental import pallas as pl
from jax.experimental.pallas import tpu as pltpu

LANES = 128
_SUBLANES = 8
_BLOCK_BYTES_TARGET = 2 * 1024 * 1024  # per-input block target size


def _dice_partial_kernel(pred_ref, tgt_ref, inter_ref, union_ref, *,
                         n_chunks, chunk, hw_valid, tile_hw, has_pad):
    """Grid = (batch, spatial_tiles).  Accumulates lane-parallel partial sums of
    the dice intersection (softmax(pred)*target) and union (softmax(pred)+target)
    into the resident (1, C, chunk, 128) output blocks."""
    s = pl.program_id(1)

    @pl.when(s == 0)
    def _():
        inter_ref[...] = jnp.zeros_like(inter_ref)
        union_ref[...] = jnp.zeros_like(union_ref)

    x = pred_ref[...].astype(jnp.float32)   # (1, C, TILE_R, 128)
    t = tgt_ref[...].astype(jnp.float32)

    # Channel softmax (axis 1).  C is a small static *major* axis, so max/sum
    # across it are hand-unrolled elementwise ops over the (TILE_R, 128) slabs
    # -- no cross-lane / XLU movement at all.
    C = x.shape[1]
    m = x[:, 0:1]
    for c in range(1, C):
        m = jnp.maximum(m, x[:, c:c + 1])
    e = jnp.exp(x - m)
    den = e[:, 0:1]
    for c in range(1, C):
        den = den + e[:, c:c + 1]
    p = e * (1.0 / den)

    if has_pad:
        # Only spatial padding needs masking: padded targets are zero, but the
        # softmax of zero-padded logits is not.  Mask is built in-kernel (no
        # extra HBM stream).
        rows = x.shape[2]
        row_i = jax.lax.broadcasted_iota(jnp.int32, (rows, LANES), 0)
        lane_i = jax.lax.broadcasted_iota(jnp.int32, (rows, LANES), 1)
        idx = s * tile_hw + row_i * LANES + lane_i
        valid = (idx < hw_valid).astype(jnp.float32)[None, None]
        p = p * valid
        t = t * valid

    pt = p * t   # intersection terms
    pu = p + t   # union terms

    # Fold TILE_R down to `chunk` sublanes with static, 8-aligned slices
    # (pure VPU adds); the final tiny reduction happens in the JAX wrapper.
    acc_i = pt[:, :, 0:chunk, :]
    acc_u = pu[:, :, 0:chunk, :]
    for k in range(1, n_chunks):
        lo = k * chunk
        acc_i = acc_i + pt[:, :, lo:lo + chunk, :]
        acc_u = acc_u + pu[:, :, lo:lo + chunk, :]

    inter_ref[...] += acc_i
    union_ref[...] += acc_u


def dice_loss(pred, target, smooth=1.0):
    """pred: [B, C, H, W] logits, target: [B, C, H, W] (e.g. one-hot) -> scalar."""
    B, C, H, W = pred.shape
    HW = H * W
    R = -(-HW // LANES)  # rows of 128 lanes

    # Choose the spatial tile so one input block is ~2 MiB (f32-equivalent).
    budget_rows = max(_SUBLANES, _BLOCK_BYTES_TARGET // (C * LANES * 4))
    budget_rows = (budget_rows // _SUBLANES) * _SUBLANES
    if R <= budget_rows:
        tile_r, n_spatial = R, 1
    else:
        tile_r = budget_rows
        n_spatial = -(-R // tile_r)

    r_pad = tile_r * n_spatial
    hw_pad = r_pad * LANES
    has_pad = hw_pad != HW

    p3 = pred.reshape(B, C, HW)
    t3 = target.reshape(B, C, HW)
    if has_pad:
        # Only hit when H*W does not tile evenly; typical segmentation shapes
        # (and the test below) take the copy-free path.
        p3 = jnp.pad(p3, ((0, 0), (0, 0), (0, hw_pad - HW)))
        t3 = jnp.pad(t3, ((0, 0), (0, 0), (0, hw_pad - HW)))
    p4 = p3.reshape(B, C, r_pad, LANES)
    t4 = t3.reshape(B, C, r_pad, LANES)

    if tile_r % _SUBLANES == 0:
        chunk, n_chunks = _SUBLANES, tile_r // _SUBLANES
    else:
        chunk, n_chunks = tile_r, 1

    kernel = functools.partial(
        _dice_partial_kernel,
        n_chunks=n_chunks, chunk=chunk,
        hw_valid=HW, tile_hw=tile_r * LANES, has_pad=has_pad)

    in_spec = pl.BlockSpec((1, C, tile_r, LANES), lambda b, s: (b, 0, s, 0))
    out_spec = pl.BlockSpec((1, C, chunk, LANES), lambda b, s: (b, 0, 0, 0))
    part_shape = jax.ShapeDtypeStruct((B, C, chunk, LANES), jnp.float32)

    inter_part, union_part = pl.pallas_call(
        kernel,
        out_shape=(part_shape, part_shape),
        grid_spec=pltpu.PrefetchScalarGridSpec(
            num_scalar_prefetch=0,
            grid=(B, n_spatial),
            in_specs=[in_spec, in_spec],
            out_specs=[out_spec, out_spec],
        ),
        compiler_params=pltpu.CompilerParams(
            dimension_semantics=("parallel", "arbitrary")),
    )(p4, t4)

    # Tiny finalize in plain JAX (also lets the batch axis be megacore-parallel).
    intersection = jnp.sum(inter_part, axis=(2, 3))   # (B, C)
    union = jnp.sum(union_part, axis=(2, 3))          # (B, C)
    dice = (2.0 * intersection + smooth) / (union + smooth)
    return 1.0 - jnp.mean(dice)


def dice_loss_ref(pred, target, smooth=1.0):
    """Pure-JAX reference mirroring the PyTorch DiceLoss module."""
    p = jax.nn.softmax(pred.astype(jnp.float32), axis=1)
    t = target.astype(jnp.float32)
    inter = jnp.sum(p * t, axis=(2, 3))
    union = jnp.sum(p, axis=(2, 3)) + jnp.sum(t, axis=(2, 3))
    dice = (2.0 * inter + smooth) / (union + smooth)
    return 1.0 - jnp.mean(dice)


if __name__ == "__main__":
    key = jax.random.PRNGKey(0)
    k1, k2 = jax.random.split(key)
    B, C, H, W = 2, 4, 16, 16
    pred = jax.random.normal(k1, (B, C, H, W), dtype=jnp.float32)
    labels = jax.random.randint(k2, (B, H, W), 0, C)
    target = jax.nn.one_hot(labels, C, dtype=jnp.float32).transpose(0, 3, 1, 2)

    loss = dice_loss(pred, target, smooth=1.0)
    loss = jax.block_until_ready(loss)

    ref = dice_loss_ref(pred, target, smooth=1.0)
    assert jnp.allclose(loss, ref, rtol=1e-5, atol=1e-5), (loss, ref)
    print("KERNEL_OK")
</pallas_src>

<mosaic_0001>
module attributes {stable_mosaic.version = 11 : i64} {
  func.func @_dice_partial_kernel(%arg0: i32, %arg1: i32, %arg2: memref<1x4x2x128xf32, #tpu.memory_space<vmem>>, %arg3: memref<1x4x2x128xf32, #tpu.memory_space<vmem>>, %arg4: memref<1x4x2x128xf32, #tpu.memory_space<vmem>>, %arg5: memref<1x4x2x128xf32, #tpu.memory_space<vmem>>) attributes {dimension_semantics = [#tpu.dimension_semantics<parallel>, #tpu.dimension_semantics<arbitrary>], iteration_bounds = array<i64: 2, 1>, scalar_prefetch = 0 : i64, scratch_operands = 0 : i64, tpu.core_type = #tpu.core_type<tc>, window_params = [{transform_indices = @transform_0, window_bounds = array<i64: 1, 4, 2, 128>}, {transform_indices = @transform_1, window_bounds = array<i64: 1, 4, 2, 128>}, {transform_indices = @transform_2, window_bounds = array<i64: 1, 4, 2, 128>}, {transform_indices = @transform_3, window_bounds = array<i64: 1, 4, 2, 128>}]} {
    %c0_i32 = arith.constant 0 : i32
    %0 = arith.cmpi eq, %arg1, %c0_i32 : i32
    %1 = arith.extui %0 : i1 to i32
    %c0_i32_0 = arith.constant 0 : i32
    %2 = arith.cmpi ne, %1, %c0_i32_0 : i32
    scf.if %2 {
      %cst_24 = arith.constant 0.000000e+00 : f32
      %34 = vector.broadcast %cst_24 : f32 to vector<1x4x2x128xf32>
      %c0_25 = arith.constant 0 : index
      %c0_26 = arith.constant 0 : index
      %c0_27 = arith.constant 0 : index
      %c0_28 = arith.constant 0 : index
      %35 = vector.load %arg4[%c0_25, %c0_26, %c0_27, %c0_28] : memref<1x4x2x128xf32, #tpu.memory_space<vmem>>, vector<1x4x2x128xf32>
      tpu.vector_store %arg4[%c0_25, %c0_26, %c0_27, %c0_28], %34 {strides = array<i32>} : memref<1x4x2x128xf32, #tpu.memory_space<vmem>>, vector<1x4x2x128xf32>,
      %cst_29 = arith.constant 0.000000e+00 : f32
      %36 = vector.broadcast %cst_29 : f32 to vector<1x4x2x128xf32>
      %c0_30 = arith.constant 0 : index
      %c0_31 = arith.constant 0 : index
      %c0_32 = arith.constant 0 : index
      %c0_33 = arith.constant 0 : index
      %37 = vector.load %arg5[%c0_30, %c0_31, %c0_32, %c0_33] : memref<1x4x2x128xf32, #tpu.memory_space<vmem>>, vector<1x4x2x128xf32>
      tpu.vector_store %arg5[%c0_30, %c0_31, %c0_32, %c0_33], %36 {strides = array<i32>} : memref<1x4x2x128xf32, #tpu.memory_space<vmem>>, vector<1x4x2x128xf32>,
    } else {
    }
    %c0 = arith.constant 0 : index
    %c0_1 = arith.constant 0 : index
    %c0_2 = arith.constant 0 : index
    %c0_3 = arith.constant 0 : index
    %3 = vector.load %arg2[%c0, %c0_1, %c0_2, %c0_3] : memref<1x4x2x128xf32, #tpu.memory_space<vmem>>, vector<1x4x2x128xf32>
    %c0_4 = arith.constant 0 : index
    %c0_5 = arith.constant 0 : index
    %c0_6 = arith.constant 0 : index
    %c0_7 = arith.constant 0 : index
    %4 = vector.load %arg3[%c0_4, %c0_5, %c0_6, %c0_7] : memref<1x4x2x128xf32, #tpu.memory_space<vmem>>, vector<1x4x2x128xf32>
    %5 = vector.extract_strided_slice %3 {offsets = [0, 0, 0, 0], sizes = [1, 1, 2, 128], strides = [1, 1, 1, 1]} : vector<1x4x2x128xf32> to vector<1x1x2x128xf32>
    %6 = vector.extract_strided_slice %3 {offsets = [0, 1, 0, 0], sizes = [1, 1, 2, 128], strides = [1, 1, 1, 1]} : vector<1x4x2x128xf32> to vector<1x1x2x128xf32>
    %7 = arith.maximumf %5, %6 : vector<1x1x2x128xf32>
    %8 = vector.extract_strided_slice %3 {offsets = [0, 2, 0, 0], sizes = [1, 1, 2, 128], strides = [1, 1, 1, 1]} : vector<1x4x2x128xf32> to vector<1x1x2x128xf32>
    %9 = arith.maximumf %7, %8 : vector<1x1x2x128xf32>
    %10 = vector.extract_strided_slice %3 {offsets = [0, 3, 0, 0], sizes = [1, 1, 2, 128], strides = [1, 1, 1, 1]} : vector<1x4x2x128xf32> to vector<1x1x2x128xf32>
    %11 = arith.maximumf %9, %10 : vector<1x1x2x128xf32>
    %12 = vector.broadcast %11 : vector<1x1x2x128xf32> to vector<1x4x2x128xf32>
    %13 = arith.subf %3, %12 : vector<1x4x2x128xf32>
    %14 = math.exp %13 : vector<1x4x2x128xf32>
    %15 = vector.extract_strided_slice %14 {offsets = [0, 0, 0, 0], sizes = [1, 1, 2, 128], strides = [1, 1, 1, 1]} : vector<1x4x2x128xf32> to vector<1x1x2x128xf32>
    %16 = vector.extract_strided_slice %14 {offsets = [0, 1, 0, 0], sizes = [1, 1, 2, 128], strides = [1, 1, 1, 1]} : vector<1x4x2x128xf32> to vector<1x1x2x128xf32>
    %17 = arith.addf %15, %16 : vector<1x1x2x128xf32>
    %18 = vector.extract_strided_slice %14 {offsets = [0, 2, 0, 0], sizes = [1, 1, 2, 128], strides = [1, 1, 1, 1]} : vector<1x4x2x128xf32> to vector<1x1x2x128xf32>
    %19 = arith.addf %17, %18 : vector<1x1x2x128xf32>
    %20 = vector.extract_strided_slice %14 {offsets = [0, 3, 0, 0], sizes = [1, 1, 2, 128], strides = [1, 1, 1, 1]} : vector<1x4x2x128xf32> to vector<1x1x2x128xf32>
    %21 = arith.addf %19, %20 : vector<1x1x2x128xf32>
    %cst = arith.constant 1.000000e+00 : f32
    %22 = vector.broadcast %cst : f32 to vector<1x1x2x128xf32>
    %23 = arith.divf %22, %21 : vector<1x1x2x128xf32>
    %24 = vector.broadcast %23 : vector<1x1x2x128xf32> to vector<1x4x2x128xf32>
    %25 = arith.mulf %14, %24 : vector<1x4x2x128xf32>
    %26 = arith.mulf %25, %4 : vector<1x4x2x128xf32>
    %27 = arith.addf %25, %4 : vector<1x4x2x128xf32>
    %c0_8 = arith.constant 0 : index
    %c0_9 = arith.constant 0 : index
    %c0_10 = arith.constant 0 : index
    %c0_11 = arith.constant 0 : index
    %28 = vector.load %arg4[%c0_8, %c0_9, %c0_10, %c0_11] : memref<1x4x2x128xf32, #tpu.memory_space<vmem>>, vector<1x4x2x128xf32>
    %29 = arith.addf %28, %26 : vector<1x4x2x128xf32>
    %c0_12 = arith.constant 0 : index
    %c0_13 = arith.constant 0 : index
    %c0_14 = arith.constant 0 : index
    %c0_15 = arith.constant 0 : index
    %30 = vector.load %arg4[%c0_12, %c0_13, %c0_14, %c0_15] : memref<1x4x2x128xf32, #tpu.memory_space<vmem>>, vector<1x4x2x128xf32>
    tpu.vector_store %arg4[%c0_12, %c0_13, %c0_14, %c0_15], %29 {strides = array<i32>} : memref<1x4x2x128xf32, #tpu.memory_space<vmem>>, vector<1x4x2x128xf32>,
    %c0_16 = arith.constant 0 : index
    %c0_17 = arith.constant 0 : index
    %c0_18 = arith.constant 0 : index
    %c0_19 = arith.constant 0 : index
    %31 = vector.load %arg5[%c0_16, %c0_17, %c0_18, %c0_19] : memref<1x4x2x128xf32, #tpu.memory_space<vmem>>, vector<1x4x2x128xf32>
    %32 = arith.addf %31, %27 : vector<1x4x2x128xf32>
    %c0_20 = arith.constant 0 : index
    %c0_21 = arith.constant 0 : index
    %c0_22 = arith.constant 0 : index
    %c0_23 = arith.constant 0 : index
    %33 = vector.load %arg5[%c0_20, %c0_21, %c0_22, %c0_23] : memref<1x4x2x128xf32, #tpu.memory_space<vmem>>, vector<1x4x2x128xf32>
    tpu.vector_store %arg5[%c0_20, %c0_21, %c0_22, %c0_23], %32 {strides = array<i32>} : memref<1x4x2x128xf32, #tpu.memory_space<vmem>>, vector<1x4x2x128xf32>,
    return
  }
  func.func @transform_0(%arg0: i32, %arg1: i32) -> (i32, i32, i32, i32) {
    %c0_i32 = arith.constant 0 : i32
    %c0_i32_0 = arith.constant 0 : i32
    %c0_i32_1 = arith.constant 0 : i32
    return %arg0, %c0_i32, %arg1, %c0_i32_0 : i32, i32, i32, i32
  }
  func.func @transform_1(%arg0: i32, %arg1: i32) -> (i32, i32, i32, i32) {
    %c0_i32 = arith.constant 0 : i32
    %c0_i32_0 = arith.constant 0 : i32
    %c0_i32_1 = arith.constant 0 : i32
    return %arg0, %c0_i32, %arg1, %c0_i32_0 : i32, i32, i32, i32
  }
  func.func @transform_2(%arg0: i32, %arg1: i32) -> (i32, i32, i32, i32) {
    %c0_i32 = arith.constant 0 : i32
    %c0_i32_0 = arith.constant 0 : i32
    %c0_i32_1 = arith.constant 0 : i32
    %c0_i32_2 = arith.constant 0 : i32
    return %arg0, %c0_i32, %c0_i32_0, %c0_i32_1 : i32, i32, i32, i32
  }
  func.func @transform_3(%arg0: i32, %arg1: i32) -> (i32, i32, i32, i32) {
    %c0_i32 = arith.constant 0 : i32
    %c0_i32_0 = arith.constant 0 : i32
    %c0_i32_1 = arith.constant 0 : i32
    %c0_i32_2 = arith.constant 0 : i32
    return %arg0, %c0_i32, %c0_i32_0, %c0_i32_1 : i32, i32, i32, i32
  }
}

</mosaic_0001>

<bundles_post_ra>
// kernel: tpu_custom_call.1
= control target key start
LH: loop header
LB: loop body
LE: loop exit
PB: predicated region body
PF: predicated region fallthrough
CT: control target
= control target key end

     0   :  { %s1079_s0 = inlined_call_operand.hbm [shape: f32[2,4,2,128], index: 0, kind: input, shape index: {}]   ;;  %s1080_s1 = inlined_call_operand.hbm [shape: f32[2,4,2,128], index: 1, kind: input, shape index: {}]   ;;  %s1081_s2 = inlined_call_operand.hbm [shape: f32[2,4,2,128], index: 2, kind: output, shape index: {0}]   ;;  %s1082_s3 = inlined_call_operand.hbm [shape: f32[2,4,2,128], index: 3, kind: output, shape index: {1}]  }
   0x1   :  { %1083 = sst [smem:[#allocation14_spill]] %s1079_s0 }
   0x2   :  { %9 = vsyncpa [#allocation3], 0 }
   0x3   :  { %11 = vsyncpa [#allocation3 + $0x1], 0 }
   0x4   :  { %12 = vsyncpa [#allocation6], 0 }
   0x5   :  { %14 = vsyncpa [#allocation6 + $0x1], 0 }
   0x6   :  { %15 = vsyncpa [#allocation4], 0 }
   0x7   :  { %17 = vsyncpa [#allocation4 + $0x1], 0 }
   0x8   :  { %18 = vsyncpa [#allocation9], 0 }
   0x9   :  { %20 = vsyncpa [#allocation9 + $0x1], 0  ;;  %s824_s12 = smov 0   ;;  %s826_s13 = smov 0  }
   0xa   :  { %s828_s14 = smov 0   ;;  %s830_s15 = smov 0  }
   0xb   :  { %s832_s16 = smov 0   ;;  %s834_s17 = smov 0  }
   0xc LB: > { %s509_s18 = sadd.s32 4294967295, %s793_s17   ;;  %s510_s19 = sadd.s32 4294967294, %s793_s17   ;;  %s793_s17 = sphi %s834_s17, %s26_s17   ;;  %s789_s16 = sphi %s832_s16, %s1095_s16   ;;  %s785_s15 = sphi %s830_s15, %s1094_s15   ;;  %s781_s14 = sphi %s828_s14, %s1093_s14   ;;  %s777_s13 = sphi %s826_s13, %s1092_s13   ;;  %s773_s12 = sphi %s824_s12, %s1091_s12  }
   0xd   : > { %s38_s20 = sadd.s32 1, %s789_s16  ;;  %s47_s21 = sadd.s32 1, %s781_s14 }
   0xe   : > { %p40_p0 = scmp.ge.s32.totalorder %s38_s20, 2  ;;  %p54_p1 = scmp.ne.s32.totalorder %s781_s14, %s777_s13 }
   0xf   : > { %p55_p2 = scmp.eq.s32.totalorder %s793_s17, 0  ;;  %p60_p3 = scmp.ne.s32.totalorder %s777_s13, %s773_s12 }
  0x10   : > { %s1097_s20 = smov (%p40_p0, %s38_s20), 0  ;;  %p61_p5 = scmp.eq.s32.totalorder %s509_s18, 0 }
  0x11   : > { %p865_p4 = por %p55_p2, %p54_p1  ;;  %s42_s23 = ssub.s32 %s789_s16, %s1097_s20 }
  0x12   : > { %p112_p6 = scmp.eq.s32.totalorder %s509_s18, 1  ;;  %p45_p7 = scmp.eq.s32.totalorder %s42_s23, 0 }
  0x13   : > { %p871_p8 = por %p61_p5, %p60_p3  ;;  %p118_p10 = scmp.eq.s32.totalorder %s510_s19, 1 }
  0x14   : > { %p875_p9 = por %p112_p6, %p54_p1  ;;  %p512_p12 = scmp.ge.s32.totalorder %s793_s17, 2 }
  0x15   : > { %s880_s26 = scalar_select %p45_p7, %s781_s14, %s47_s21  }
  0x16   : > { %p882_p11 = por %p118_p10, %p60_p3  ;;  %p558_p13 = scmp.lt.s32.totalorder %s793_s17, 2 }
  0x17   : > { %s889_s28 = sand.u32 1, %s781_s14   ;;  %s532_s30 = sshll.u32 %s789_s16, 7 }
  0x18   : > { %s513_s29 = sshll.u32 %s889_s28, 3  ;;  %s1088_s0 = sld [smem:[#allocation14_spill]] }
  0x19   : > { %s168_s7 = scalar_lea.vmem [#allocation2], %s513_s29  ;;  %p902_p0 = pnand %p558_p13, %p865_p4 }
  0x1a   : > { %s176_s8 = sshll.u32 %s168_s7, 4  ;;  %p519_p1 = scmp.ge.s32.totalorder %s793_s17, 1  ;;  %s177_s8 = int_to_ptr.vmem [resolvable:$true] %s176_s8 }
  0x1b   : > { %s165_s10 = scalar_lea.sflag [#allocation3], %s889_s28  ;;  %p625_p2 = pneg %p902_p0 }
  0x1c   : > { %s636_s11 = scalar_lea.vmem %s177_s8, 128  ;;  %s795_s18 = smov [#allocation2]  }
  0x1d   : > { %p637_p3 = scmp.ne.s32.totalorder %s177_s8, %s636_s11  ;;  %s641_s19 = sshll.u32 %s795_s18, 4  ;;  %s642_s19 = int_to_ptr.vmem [resolvable:$false] %s641_s19 }
  0x1e   : > { %s175_s6 = scalar_lea.hbm %s1088_s0, %s532_s30  ;;  %s643_s21 = scalar_lea.vmem %s642_s19, 256 }
  0x1f   : > { %p639_p5 = pnand %p637_p3, %p625_p2  ;;  %p644_p4 = scmp.lt.s32.totalorder %s177_s8, %s642_s19 }
  0x20   : > { %p645_p7 = scmp.lt.s32.totalorder %s643_s21, %s636_s11 }
  0x21   : > { %p640_p6 = pneg %p639_p5 }
  0x22   : > { %p646_p10 = por %p645_p7, %p644_p4 }
  0x24   : > { %p647_p13 = pnand %p646_p10, %p640_p6 }
  0x26   : > { %650 = shalt.err (!%p647_p13)
}
  0x27   : > { %s796_s22 = smov 32   ;;  %s797_s23 = smov 2  }
  0x28   : > { %547 = dma.hbm_to_vmem [thread:$0]  (!%p902_p0), %s175_s6, 128, %s177_s8, %s165_s10, %s796_s22, %s796_s22, %s797_s23  }
  0x29   : > { %p206_p3 = scmp.lt.s32.totalorder %s793_s17, 3  ;;  %s197_s7 = scalar_lea.hbm %s1080_s1, %s532_s30 }
  0x2a   : > { %s190_s18 = scalar_lea.vmem [#allocation5], %s513_s29  ;;  %s187_s21 = scalar_lea.sflag [#allocation6], %s889_s28 }
  0x2b   : > { %p923_p5 = pnand %p519_p1, %p206_p3  ;;  %s198_s19 = sshll.u32 %s190_s18, 4  ;;  %s199_s19 = int_to_ptr.vmem [resolvable:$true] %s198_s19 }
  0x2c   : > { %s664_s0 = scalar_lea.vmem %s199_s19, 128  ;;  %s798_s6 = smov [#allocation5]  }
  0x2d   : > { %p665_p6 = scmp.ne.s32.totalorder %s199_s19, %s664_s0  ;;  %s669_s8 = sshll.u32 %s798_s6, 4  ;;  %s670_s8 = int_to_ptr.vmem [resolvable:$false] %s669_s8 }
  0x2e   : > { %s671_s30 = scalar_lea.vmem %s670_s8, 256  ;;  %p672_p10 = scmp.lt.s32.totalorder %s199_s19, %s670_s8 }
  0x2f   : > { %p667_p4 = pnand %p665_p6, %p625_p2  ;;  %p673_p1 = scmp.lt.s32.totalorder %s671_s30, %s664_s0 }
  0x31   : > { %p668_p7 = pneg %p667_p4  ;;  %p674_p13 = por %p673_p1, %p672_p10 }
  0x33   : > { %p675_p3 = pnand %p674_p13, %p668_p7 }
  0x35   : > { %678 = shalt.err (!%p675_p3)
}
  0x36   : > { %550 = dma.hbm_to_vmem [thread:$0]  (!%p902_p0), %s197_s7, 128, %s199_s19, %s187_s21, %s796_s22, %s796_s22, %s797_s23  }
  0x37   : > { %210 = sbr.rel (%p923_p5) target bundleno = 155 (0x9b), region = 28  ;;  %s938_s28 = sand.u32 (!%p923_p5), 1, %s777_s13  }
  0x38   : > { %s520_s29 = sshll.u32 (!%p923_p5), %s938_s28, 3  ;;  %s213_s10 = scalar_lea.sflag (!%p923_p5), [#allocation3], %s938_s28 }
  0x39   : > { %s216_s4 = scalar_lea.vmem (!%p923_p5), [#allocation2], %s520_s29 }
  0x3c   : > { %756 = dma.done.wait (%p871_p8), %s213_s10, 128  }
  0x3d   : > { %758 = vsyncadd (%p871_p8), %s213_s10, 4294967168  ;;  %s222_s0 = scalar_lea.sflag [#allocation6], %s938_s28  ;;  %s947_s9 = scalar_lea.vmem [#allocation5], %s520_s29 }
  0x3e   : > { %760 = dma.done.wait (%p871_p8), %s222_s0, 128  }
  0x3f   : > { %762 = vsyncadd (%p871_p8), %s222_s0, 4294967168  ;;  %s953_s22 = scalar_lea.vmem [#allocation7], %s520_s29  ;;  %v799_v0 = vmov 0.0   ;;  %s959_s23 = scalar_lea.vmem [#allocation8], %s520_s29  ;;  %v270_v1 = vld [vmem:[%s216_s4] sm:$0x3] }
  0x40   : > { %262 = vst [vmem:[%s953_s22] sm:$0x3] %v799_v0  ;;  %263 = vst [vmem:[%s953_s22 + $0x2] sm:$0x3] %v799_v0  ;;  %v271_v2 = vld [vmem:[%s216_s4 + $0x2] sm:$0x3]  ;;  %s534_s24 = sshll.u32 %s785_s15, 7 }
  0x41   : > { %264 = vst [vmem:[%s953_s22 + $0x4] sm:$0x3] %v799_v0  ;;  %265 = vst [vmem:[%s953_s22 + $0x6] sm:$0x3] %v799_v0  ;;  %v272_v3 = vld [vmem:[%s216_s4 + $0x4] sm:$0x3]  ;;  %v278_v4 = vmax.f32 %v270_v1, %v271_v2  ;;  %s985_s19 = scalar_lea.hbm %s1081_s2, %s534_s24  ;;  %s994_s8 = scalar_lea.hbm %s1082_s3, %s534_s24 }
  0x42   : > { %266 = vst [vmem:[%s959_s23] sm:$0x3] %v799_v0  ;;  %267 = vst [vmem:[%s959_s23 + $0x2] sm:$0x3] %v799_v0  ;;  %v273_v5 = vld [vmem:[%s216_s4 + $0x6] sm:$0x3]  ;;  %s353_s5 = sshll.u32 %s953_s22, 4  ;;  %s987_s5 = int_to_ptr.vmem [resolvable:$true] %s353_s5 }
  0x43   : > { %268 = vst [vmem:[%s959_s23 + $0x4] sm:$0x3] %v799_v0  ;;  %269 = vst [vmem:[%s959_s23 + $0x6] sm:$0x3] %v799_v0  ;;  %v279_v6 = vmax.f32 %v278_v4, %v272_v3  ;;  %v274_v23 = vld [vmem:[%s947_s9] sm:$0x3] }
  0x44   : > { %v275_v25 = vld [vmem:[%s947_s9 + $0x2] sm:$0x3]  ;;  %v276_v26 = vld [vmem:[%s947_s9 + $0x4] sm:$0x3]  ;;  %v277_v27 = vld [vmem:[%s947_s9 + $0x6] sm:$0x3] }
  0x45   : > { %v280_v7 = vmax.f32 %v279_v6, %v273_v5  ;;  %s369_s7 = sshll.u32 %s959_s23, 4  ;;  %s335_s30 = scalar_lea.sflag [#allocation4], %s938_s28  ;;  %s996_s7 = int_to_ptr.vmem [resolvable:$true] %s369_s7 }
  0x46   : > { %s679_s29 = scalar_lea.vmem %s987_s5, 128  ;;  %s800_s15 = smov [#allocation7]  }
  0x47   : > { %v281_v8 = vsub.f32 %v270_v1, %v280_v7  ;;  %v282_v9 = vsub.f32 %v271_v2, %v280_v7  ;;  %v283_v10 = vsub.f32 %v272_v3, %v280_v7  ;;  %v284_v11 = vsub.f32 %v273_v5, %v280_v7  ;;  %v310_v29 = vld [vmem:[%s953_s22] sm:$0x3]  ;;  %v311_v31 = vld [vmem:[%s953_s22 + $0x2] sm:$0x3]  ;;  %p680_p8 = scmp.ne.s32.totalorder %s987_s5, %s679_s29  ;;  %s683_s10 = sshll.u32 %s800_s15, 4  ;;  %s684_s10 = int_to_ptr.vmem [resolvable:$false] %s683_s10 }
  0x48   : > { %v312_v34 = vld [vmem:[%s953_s22 + $0x4] sm:$0x3]  ;;  %v313_v35 = vld [vmem:[%s953_s22 + $0x6] sm:$0x3]  ;;  %s685_s4 = scalar_lea.vmem %s684_s10, 256  ;;  %p686_p5 = scmp.lt.s32.totalorder %s987_s5, %s684_s10 }
  0x49   : > { %v285_v12 = vmul.f32 1.442695, %v281_v8  ;;  %v287_v13 = vmul.f32 1.442695, %v282_v9  ;;  %v289_v14 = vmul.f32 1.442695, %v283_v10  ;;  %p681_p0 = pnand %p680_p8, %p875_p9  ;;  %p687_p6 = scmp.lt.s32.totalorder %s685_s4, %s679_s29 }
  0x4a   : > { %v291_v15 = vmul.f32 1.442695, %v284_v11  ;;  %v322_v36 = vld [vmem:[%s959_s23] sm:$0x3]  ;;  %v323_v41 = vld [vmem:[%s959_s23 + $0x2] sm:$0x3] }
  0x4b   : > { %613 = vpow2.f32 %v285_v12  ;;  %v324_v42 = vld [vmem:[%s959_s23 + $0x4] sm:$0x3]  ;;  %v325_v43 = vld [vmem:[%s959_s23 + $0x6] sm:$0x3]  ;;  %p682_p2 = pneg %p681_p0  ;;  %p688_p4 = por %p687_p6, %p686_p5 }
  0x4c   : > { %615 = vpow2.f32 %v287_v13 }
  0x4d   : > { %617 = vpow2.f32 %v289_v14  ;;  %p689_p7 = pnand %p688_p4, %p682_p2 }
  0x4e   : > { %619 = vpow2.f32 %v291_v15 }
  0x58   : > { %v614_v16 = vpop.eup %613 }
  0x59   : > { %v616_v17 = vpop.eup %615 }
  0x5a   : > { %v618_v18 = vpop.eup %617  ;;  %v293_v19 = vadd.f32 %v616_v17, %v614_v16 }
  0x5b   : > { %v620_v20 = vpop.eup %619 }
  0x5c   : > { %v294_v21 = vadd.f32 %v618_v18, %v293_v19 }
  0x5e   : > { %v295_v22 = vadd.f32 %v620_v20, %v294_v21 }
  0x60   : > { %621 = vrcp.f32 %v295_v22 }
  0x6d   : > { %v622_v24 = vpop.eup %621 }
  0x6e   : > { %v298_v28 = vmul.f32 %v622_v24, %v614_v16  ;;  %v299_v30 = vmul.f32 %v622_v24, %v616_v17  ;;  %v300_v32 = vmul.f32 %v622_v24, %v618_v18  ;;  %v301_v33 = vmul.f32 %v622_v24, %v620_v20 }
  0x70   : > { %v302_v37 = vmul.f32 %v298_v28, %v274_v23  ;;  %v303_v38 = vmul.f32 %v299_v30, %v275_v25  ;;  %v304_v39 = vmul.f32 %v300_v32, %v276_v26  ;;  %v305_v40 = vmul.f32 %v301_v33, %v277_v27 }
  0x71   : > { %v306_v44 = vadd.f32 %v298_v28, %v274_v23  ;;  %v307_v45 = vadd.f32 %v299_v30, %v275_v25  ;;  %v308_v46 = vadd.f32 %v300_v32, %v276_v26  ;;  %v309_v47 = vadd.f32 %v301_v33, %v277_v27 }
  0x72   : > { %v314_v48 = vadd.f32 %v310_v29, %v302_v37  ;;  %v315_v49 = vadd.f32 %v311_v31, %v303_v38  ;;  %v316_v50 = vadd.f32 %v312_v34, %v304_v39  ;;  %v317_v51 = vadd.f32 %v313_v35, %v305_v40 }
  0x73   : > { %v326_v52 = vadd.f32 %v322_v36, %v306_v44  ;;  %v327_v53 = vadd.f32 %v323_v41, %v307_v45  ;;  %v328_v54 = vadd.f32 %v324_v42, %v308_v46  ;;  %v329_v55 = vadd.f32 %v325_v43, %v309_v47 }
  0x74   : > { %318 = vst [vmem:[%s953_s22] sm:$0x3] %v314_v48  ;;  %319 = vst [vmem:[%s953_s22 + $0x2] sm:$0x3] %v315_v49 }
  0x75   : > { %320 = vst [vmem:[%s953_s22 + $0x4] sm:$0x3] %v316_v50  ;;  %321 = vst [vmem:[%s953_s22 + $0x6] sm:$0x3] %v317_v51 }
  0x76   : > { %330 = vst [vmem:[%s959_s23] sm:$0x3] %v326_v52  ;;  %331 = vst [vmem:[%s959_s23 + $0x2] sm:$0x3] %v327_v53 }
  0x77   : > { %332 = vst [vmem:[%s959_s23 + $0x4] sm:$0x3] %v328_v54  ;;  %333 = vst [vmem:[%s959_s23 + $0x6] sm:$0x3] %v329_v55 }
  0x78   : > { %692 = shalt.err (!%p689_p7)
}
  0x79   : > { %s693_s0 = scalar_lea.hbm %s985_s19, 128  ;;  %s697_s23 = scalar_lea.hbm %s1081_s2, 256 }
  0x7a   : > { %p694_p10 = scmp.ne.s32.totalorder %s985_s19, %s693_s0  ;;  %p698_p3 = scmp.lt.s32.totalorder %s985_s19, %s1081_s2 }
  0x7b   : > { %p699_p8 = scmp.lt.s32.totalorder %s697_s23, %s693_s0 }
  0x7c   : > { %p695_p1 = pnand %p694_p10, %p875_p9 }
  0x7d   : > { %p700_p0 = por %p699_p8, %p698_p3 }
  0x7e   : > { %p696_p13 = pneg %p695_p1 }
  0x80   : > { %p701_p2 = pnand %p700_p0, %p696_p13 }
  0x82   : > { %704 = shalt.err (!%p701_p2)
}
  0x83   : > { %s801_s18 = smov 32   ;;  %s802_s21 = smov 2  }
  0x84   : > { %540 = dma.vmem_to_hbm [thread:$0]  (%p875_p9), %s987_s5, 128, %s985_s19, %s335_s30, %s801_s18, %s801_s18, %s802_s21  }
  0x85   : > { %s340_s6 = scalar_lea.sflag [#allocation9], %s938_s28  ;;  %s705_s29 = scalar_lea.vmem %s996_s7, 128 }
  0x86   : > { %p706_p5 = scmp.ne.s32.totalorder %s996_s7, %s705_s29  ;;  %s803_s15 = smov [#allocation8]  }
  0x87   : > { %s709_s10 = sshll.u32 %s803_s15, 4  ;;  %s710_s10 = int_to_ptr.vmem [resolvable:$false] %s709_s10 }
  0x88   : > { %p707_p6 = pnand %p706_p5, %p875_p9  ;;  %s711_s4 = scalar_lea.vmem %s710_s10, 256 }
  0x89   : > { %p712_p7 = scmp.lt.s32.totalorder %s996_s7, %s710_s10  ;;  %p713_p10 = scmp.lt.s32.totalorder %s711_s4, %s705_s29 }
  0x8a   : > { %p708_p4 = pneg %p707_p6 }
  0x8b   : > { %p714_p1 = por %p713_p10, %p712_p7 }
  0x8d   : > { %p715_p13 = pnand %p714_p1, %p708_p4 }
  0x8f   : > { %718 = shalt.err (!%p715_p13)
}
  0x90   : > { %s719_s5 = scalar_lea.hbm %s994_s8, 128  ;;  %s723_s30 = scalar_lea.hbm %s1082_s3, 256 }
  0x91   : > { %p720_p3 = scmp.ne.s32.totalorder %s994_s8, %s719_s5  ;;  %p724_p2 = scmp.lt.s32.totalorder %s994_s8, %s1082_s3 }
  0x92   : > { %p725_p5 = scmp.lt.s32.totalorder %s723_s30, %s719_s5 }
  0x93   : > { %p721_p8 = pnand %p720_p3, %p875_p9 }
  0x94   : > { %p726_p6 = por %p725_p5, %p724_p2 }
  0x95   : > { %p722_p0 = pneg %p721_p8 }
  0x97   : > { %p727_p4 = pnand %p726_p6, %p722_p0 }
  0x99   : > { %730 = shalt.err (!%p727_p4)
}
  0x9a   : > { %541 = dma.vmem_to_hbm [thread:$0]  (%p875_p9), %s996_s7, 128, %s994_s8, %s340_s6, %s801_s18, %s801_s18, %s802_s21  }
  0x9b PF: > { %s384_s22 = sand.u32 1, %s773_s12   ;;  %p552_p7 = pnand %p512_p12, %p882_p11 }
  0x9c   : > { %s385_s23 = scalar_lea.sflag [#allocation4], %s384_s22 }
  0x9d   : > { %p553_p10 = pneg %p552_p7 }
  0x9f   : > { %764 = dma.done.wait (%p553_p10), %s385_s23, 128  }
  0xa0   : > { %766 = vsyncadd (%p553_p10), %s385_s23, 4294967168  ;;  %s394_s24 = scalar_lea.sflag [#allocation9], %s384_s22 }
  0xa1   : > { %768 = dma.done.wait (%p553_p10), %s394_s24, 128  }
  0xa2   : > { %770 = vsyncadd (%p553_p10), %s394_s24, 4294967168  ;;  %s26_s17 = sadd.s32 1, %s793_s17   ;;  %s1091_s12 = smov %s777_s13 }
  0xa3   : > { %p23_p1 = scmp.ge.s32.totalorder %s26_s17, 4   ;;  %s1092_s13 = smov %s781_s14 }
  0xa4   : > { %s1093_s14 = smov %s880_s26  ;;  %s1094_s15 = smov %s789_s16 }
  0xa5   : > { %s1095_s16 = smov %s1097_s20  ;;  %25 = sbr.rel (!%p23_p1) target bundleno = 12 (0xc), region = 107 }
  0xaa   :  { %399 = vsyncpa [#allocation3], 1 }
  0xab   :  { %401 = vsyncpa [#allocation3 + $0x1], 1 }
  0xac   :  { %402 = vsyncpa [#allocation6], 1 }
  0xad   :  { %404 = vsyncpa [#allocation6 + $0x1], 1 }
  0xae   :  { %405 = vsyncpa [#allocation4], 1 }
  0xaf   :  { %407 = vsyncpa [#allocation4 + $0x1], 1 }
  0xb0   :  { %408 = vsyncpa [#allocation9], 1 }
  0xb1   :  { %410 = vsyncpa [#allocation9 + $0x1], 1 }

</bundles_post_ra>
